<compile_context>
chip_gen: v6e
topology: v6e:2x2x1
jax: 0.10.0
libtpu: 0.0.40
codegen_flags: <defaults>
</compile_context>

<pallas_src>
import jax
import jax.numpy as jnp
from jax.experimental import pallas as pl
from jax.experimental.pallas import tpu as pltpu


_MAX_TB = 512                       # rows per grid step (multiple of 8)
_TILE_VMEM_BUDGET = 24 * 1024 * 1024  # bytes for double-buffered feat+centers tiles


def _round_up(x, m):
    return ((x + m - 1) // m) * m


def _cdiv(a, b):
    return -(-a // b)


def _choose_grid(rows, lanes, target_steps=4):
    """Pick (tb, nb, padded_rows): tb multiple of 8, VMEM-budgeted, nb even if > 1."""
    per_row_bytes = 4 * lanes * 4            # 2 streamed arrays x 2 buffers x f32
    tb_vmem = max(8, (_TILE_VMEM_BUDGET // per_row_bytes) // 8 * 8)
    tb = _round_up(_cdiv(_round_up(rows, 8), target_steps), 8)
    tb = max(8, min(tb, _MAX_TB, tb_vmem))
    nb = _cdiv(rows, tb)
    if nb > 1 and nb % 2:
        nb += 1                              # even grid -> balanced across v7x's 2 TCs
    return tb, nb, nb * tb


def _wsse_kernel(w_ref, feat_ref, cent_ref, out_ref):
    # w_ref:    (TB, 1) per-row weights  OR  (TB, 128) per-element weights (packed path)
    # feat_ref: (TB, L) features
    # cent_ref: (TB, L) gathered centers[y]
    # out_ref:  (8, 128) lane-dense per-block partial sum
    diff = feat_ref[...].astype(jnp.float32) - cent_ref[...].astype(jnp.float32)
    partial = jnp.sum(diff * diff * w_ref[...].astype(jnp.float32))
    out_ref[...] = jnp.broadcast_to(partial, out_ref.shape)


def _weighted_sse(w2d, feat2d, cent2d, tb, nb):
    rows, lanes = feat2d.shape
    w_lanes = w2d.shape[1]
    needed = 2 * (2 * tb * lanes * 4) + 2 * tb * w_lanes * 4 + 2 * 8 * 128 * 4
    vmem_limit = int(min(48 << 20, max(needed + (4 << 20), 8 << 20)))

    out = pl.pallas_call(
        _wsse_kernel,
        out_shape=jax.ShapeDtypeStruct((nb * 8, 128), jnp.float32),
        grid=(nb,),
        in_specs=[
            pl.BlockSpec((tb, w_lanes), lambda i: (i, 0)),   # weights
            pl.BlockSpec((tb, lanes), lambda i: (i, 0)),     # features
            pl.BlockSpec((tb, lanes), lambda i: (i, 0)),     # gathered centers
        ],
        out_specs=pl.BlockSpec((8, 128), lambda i: (i, 0)),  # lane-dense partials
        compiler_params=pltpu.CompilerParams(
            dimension_semantics=("parallel",),               # no carried state
            vmem_limit_bytes=vmem_limit),
    )(w2d, feat2d, cent2d)

    # Tiny final reduction over per-block partials (every element of a block is equal).
    return jnp.sum(out[::8, 0])


def center_loss(y, feat, centers, loss_weight=1.0):
    num_classes, feat_dim = centers.shape
    batch = feat.shape[0]
    if feat.shape[1] != feat_dim:
        raise ValueError(
            "Center's dim: {0} should be equal to input feature's dim: {1}".format(
                feat_dim, feat.shape[1]))
    y = y.astype(jnp.int32)

    # torch.histc(y.float(), bins=C, min=0, max=C) + 1  (labels in [0, C))
    hist = jnp.zeros((num_classes,), jnp.float32).at[y].add(1.0) + 1.0
    counts = hist[y]                                         # (batch,)
    w = (float(loss_weight) * 0.5) / counts                  # fold weight & divide
    w = w.astype(jnp.float32)

    feat = feat.astype(jnp.float32)
    centers_y = jnp.take(centers.astype(jnp.float32), y, axis=0)   # (batch, D) gather

    if feat_dim < 128 and 128 % feat_dim == 0:
        # Pack 128/D samples per 128-lane row; weights become per-element.
        k = 128 // feat_dim
        rows = _cdiv(batch, k)
        tb, nb, padded_rows = _choose_grid(rows, 128)
        padded_batch = padded_rows * k
        pad = padded_batch - batch
        feat2d = jnp.pad(feat, ((0, pad), (0, 0))).reshape(padded_rows, 128)
        cent2d = jnp.pad(centers_y, ((0, pad), (0, 0))).reshape(padded_rows, 128)
        w2d = jnp.pad(jnp.broadcast_to(w[:, None], (batch, feat_dim)),
                      ((0, pad), (0, 0))).reshape(padded_rows, 128)
    else:
        # General path: pad feature dim to a lane multiple; per-row weights.
        dp = _round_up(feat_dim, 128)
        tb, nb, padded_rows = _choose_grid(batch, dp)
        pad_b = padded_rows - batch
        feat2d = jnp.pad(feat, ((0, pad_b), (0, dp - feat_dim)))
        cent2d = jnp.pad(centers_y, ((0, pad_b), (0, dp - feat_dim)))
        w2d = jnp.pad(w, (0, pad_b)).reshape(padded_rows, 1)

    # Padding rows/cols contribute nothing: feat=centers=0 there and w=0 on pad rows.
    return _weighted_sse(w2d, feat2d, cent2d, tb, nb)


def _reference(y, feat, centers, loss_weight):
    num_classes = centers.shape[0]
    hist = jnp.zeros((num_classes,), jnp.float32).at[y].add(1.0) + 1.0
    cc = hist[y]
    diff = feat - centers[y]
    return loss_weight * 0.5 * jnp.sum(jnp.sum(diff * diff, axis=1) / cc)


if __name__ == "__main__":
    key = jax.random.PRNGKey(0)

    # Case 1: small feature dim (exercises the lane-packing path).
    k1, k2, k3 = jax.random.split(key, 3)
    num_classes, feat_dim, batch, loss_weight = 10, 32, 8, 1.0
    centers = jax.random.normal(k1, (num_classes, feat_dim), dtype=jnp.float32)
    feat = jax.random.normal(k2, (batch, feat_dim), dtype=jnp.float32)
    y = jax.random.randint(k3, (batch,), 0, num_classes, dtype=jnp.int32)

    loss = jax.block_until_ready(center_loss(y, feat, centers, loss_weight))
    ref = _reference(y, feat, centers, loss_weight)
    assert jnp.allclose(loss, ref, rtol=1e-5, atol=1e-5), (loss, ref)

    # Case 2: lane-wide feature dim (exercises the general streaming path).
    k4, k5, k6 = jax.random.split(jax.random.PRNGKey(1), 3)
    num_classes2, feat_dim2, batch2, loss_weight2 = 7, 128, 20, 0.5
    centers2 = jax.random.normal(k4, (num_classes2, feat_dim2), dtype=jnp.float32)
    feat2 = jax.random.normal(k5, (batch2, feat_dim2), dtype=jnp.float32)
    y2 = jax.random.randint(k6, (batch2,), 0, num_classes2, dtype=jnp.int32)

    loss2 = jax.block_until_ready(center_loss(y2, feat2, centers2, loss_weight2))
    ref2 = _reference(y2, feat2, centers2, loss_weight2)
    assert jnp.allclose(loss2, ref2, rtol=1e-5, atol=1e-5), (loss2, ref2)

    print("KERNEL_OK")
</pallas_src>

<mosaic_0001>
module attributes {stable_mosaic.version = 11 : i64} {
  func.func @_wsse_kernel(%arg0: i32, %arg1: memref<8x128xf32, #tpu.memory_space<vmem>>, %arg2: memref<8x128xf32, #tpu.memory_space<vmem>>, %arg3: memref<8x128xf32, #tpu.memory_space<vmem>>, %arg4: memref<8x128xf32, #tpu.memory_space<vmem>>) attributes {dimension_semantics = [#tpu.dimension_semantics<parallel>], iteration_bounds = array<i64: 1>, scalar_prefetch = 0 : i64, scratch_operands = 0 : i64, tpu.core_type = #tpu.core_type<tc>, window_params = [{transform_indices = @transform_0, window_bounds = array<i64: 8, 128>}, {transform_indices = @transform_1, window_bounds = array<i64: 8, 128>}, {transform_indices = @transform_2, window_bounds = array<i64: 8, 128>}, {transform_indices = @transform_3, window_bounds = array<i64: 8, 128>}]} {
    %c0 = arith.constant 0 : index
    %c0_0 = arith.constant 0 : index
    %0 = vector.load %arg2[%c0, %c0_0] : memref<8x128xf32, #tpu.memory_space<vmem>>, vector<8x128xf32>
    %c0_1 = arith.constant 0 : index
    %c0_2 = arith.constant 0 : index
    %1 = vector.load %arg3[%c0_1, %c0_2] : memref<8x128xf32, #tpu.memory_space<vmem>>, vector<8x128xf32>
    %2 = arith.subf %0, %1 : vector<8x128xf32>
    %3 = arith.mulf %2, %2 : vector<8x128xf32>
    %c0_3 = arith.constant 0 : index
    %c0_4 = arith.constant 0 : index
    %4 = vector.load %arg1[%c0_3, %c0_4] : memref<8x128xf32, #tpu.memory_space<vmem>>, vector<8x128xf32>
    %5 = arith.mulf %3, %4 : vector<8x128xf32>
    %6 = vector.shape_cast %5 : vector<8x128xf32> to vector<1x8x128xf32>
    %cst = arith.constant dense<0.000000e+00> : vector<1xf32>
    %7 = vector.multi_reduction <add>, %6, %cst [1, 2] : vector<1x8x128xf32> to vector<1xf32>
    %8 = vector.shape_cast %7 : vector<1xf32> to vector<1x1x1xf32>
    %9 = vector.extract %8[0, 0, 0] : f32 from vector<1x1x1xf32>
    %10 = vector.broadcast %9 : f32 to vector<8x128xf32>
    %c0_5 = arith.constant 0 : index
    %c0_6 = arith.constant 0 : index
    %11 = vector.load %arg4[%c0_5, %c0_6] : memref<8x128xf32, #tpu.memory_space<vmem>>, vector<8x128xf32>
    tpu.vector_store %arg4[%c0_5, %c0_6], %10 {strides = array<i32>} : memref<8x128xf32, #tpu.memory_space<vmem>>, vector<8x128xf32>,
    return
  }
  func.func @transform_0(%arg0: i32) -> (i32, i32) {
    %c0_i32 = arith.constant 0 : i32
    %c0_i32_0 = arith.constant 0 : i32
    return %arg0, %c0_i32 : i32, i32
  }
  func.func @transform_1(%arg0: i32) -> (i32, i32) {
    %c0_i32 = arith.constant 0 : i32
    %c0_i32_0 = arith.constant 0 : i32
    return %arg0, %c0_i32 : i32, i32
  }
  func.func @transform_2(%arg0: i32) -> (i32, i32) {
    %c0_i32 = arith.constant 0 : i32
    %c0_i32_0 = arith.constant 0 : i32
    return %arg0, %c0_i32 : i32, i32
  }
  func.func @transform_3(%arg0: i32) -> (i32, i32) {
    %c0_i32 = arith.constant 0 : i32
    %c0_i32_0 = arith.constant 0 : i32
    return %arg0, %c0_i32 : i32, i32
  }
}

</mosaic_0001>

<bundles_post_ra>
// kernel: tpu_custom_call.1
= control target key start
LH: loop header
LB: loop body
LE: loop exit
PB: predicated region body
PF: predicated region fallthrough
CT: control target
= control target key end

     0   :  { %8 = vsyncpa [#allocation3], 0  ;;  %s211_s0 = inlined_call_operand.hbm [shape: f32[8,128], index: 0, kind: input, shape index: {}]   ;;  %s212_s1 = inlined_call_operand.hbm [shape: f32[8,128], index: 1, kind: input, shape index: {}]   ;;  %s213_s2 = inlined_call_operand.hbm [shape: f32[8,128], index: 2, kind: input, shape index: {}]   ;;  %s214_s3 = inlined_call_operand.hbm [shape: f32[8,128], index: 3, kind: output, shape index: {}]  }
   0x1   :  { %9 = vsyncpa [#allocation6], 0 }
   0x2   :  { %10 = vsyncpa [#allocation4], 0  ;;  %s175_s12 = smov [#allocation5]   ;;  %s176_s14 = smov [#allocation2]  }
   0x3   :  { %s27_s13 = sshll.u32 %s175_s12, 4  ;;  %s17_s15 = sshll.u32 %s176_s14, 4  ;;  %s28_s13 = int_to_ptr.vmem [resolvable:$true] %s27_s13  ;;  %s18_s15 = int_to_ptr.vmem [resolvable:$true] %s17_s15 }
   0x4   :  { %s97_s16 = scalar_lea.vmem %s28_s13, 128  ;;  %p102_p1 = scmp.lt.s32.totalorder %s28_s13, %s28_s13 }
   0x5   :  { %p98_p0 = scmp.ne.s32.totalorder %s28_s13, %s97_s16  ;;  %p103_p2 = scmp.lt.s32.totalorder %s97_s16, %s97_s16 }
   0x7   :  { %p104_p3 = por %p103_p2, %p102_p1 }
   0x9   :  { %p105_p4 = pnand %p104_p3, %p98_p0 }
   0xb   :  { %108 = shalt.err (!%p105_p4)
}
   0xc   :  { %30 = dma.hbm_to_vmem [thread:$0]  %s212_s1, 128, %s28_s13, [#allocation6]  }
   0xd   :  { %s117_s19 = scalar_lea.vmem %s18_s15, 128  ;;  %p122_p6 = scmp.lt.s32.totalorder %s18_s15, %s18_s15 }
   0xe   :  { %p118_p5 = scmp.ne.s32.totalorder %s18_s15, %s117_s19  ;;  %p123_p7 = scmp.lt.s32.totalorder %s117_s19, %s117_s19 }
  0x10   :  { %p124_p8 = por %p123_p7, %p122_p6 }
  0x12   :  { %p125_p9 = pnand %p124_p8, %p118_p5 }
  0x14   :  { %128 = shalt.err (!%p125_p9)
}
  0x15   :  { %20 = dma.hbm_to_vmem [thread:$0]  %s211_s0, 128, %s18_s15, [#allocation3]  }
  0x16   :  { %s177_s22 = smov [#allocation7]  }
  0x17   :  { %s37_s23 = sshll.u32 %s177_s22, 4  ;;  %s38_s23 = int_to_ptr.vmem [resolvable:$true] %s37_s23 }
  0x18   :  { %s137_s24 = scalar_lea.vmem %s38_s23, 128  ;;  %p142_p11 = scmp.lt.s32.totalorder %s38_s23, %s38_s23 }
  0x19   :  { %p138_p10 = scmp.ne.s32.totalorder %s38_s23, %s137_s24  ;;  %p143_p12 = scmp.lt.s32.totalorder %s137_s24, %s137_s24 }
  0x1b   :  { %p144_p13 = por %p143_p12, %p142_p11 }
  0x1d   :  { %p145_p0 = pnand %p144_p13, %p138_p10 }
  0x1f   :  { %148 = shalt.err (!%p145_p0)
}
  0x20   :  { %40 = dma.hbm_to_vmem [thread:$0]  %s213_s2, 128, %s38_s23, [#allocation6]  }
  0x21   :  { %169 = dma.done.wait [#allocation3], 128  }
  0x22   :  { %170 = vsyncadd [#allocation3], 4294967168 }
  0x23   :  { %171 = dma.done.wait [#allocation6], 256  }
  0x24   :  { %172 = vsyncadd [#allocation6], 4294967040  ;;  %v50_v0 = vld [vmem:[#allocation5] sm:$0xff]  ;;  %v51_v1 = vld [vmem:[#allocation7] sm:$0xff]  ;;  %s178_s0 = smov [#allocation8]  }
  0x25   :  { %v52_v2 = vsub.f32 %v50_v0, %v51_v1  ;;  %v54_v3 = vld [vmem:[#allocation2] sm:$0xff]  ;;  %s73_s2 = sshll.u32 %s178_s0, 4  ;;  %s74_s2 = int_to_ptr.vmem [resolvable:$true] %s73_s2 }
  0x26   :  { %s149_s27 = scalar_lea.vmem %s74_s2, 128  ;;  %p154_p2 = scmp.lt.s32.totalorder %s74_s2, %s74_s2 }
  0x27   :  { %v53_v4 = vmul.f32 %v52_v2, %v52_v2  ;;  %p150_p1 = scmp.ne.s32.totalorder %s74_s2, %s149_s27  ;;  %p155_p3 = scmp.lt.s32.totalorder %s149_s27, %s149_s27 }
  0x29   :  { %v55_v5 = vmul.f32 %v54_v3, %v53_v4  ;;  %p156_p4 = por %p155_p3, %p154_p2 }
  0x2b   :  { %56 = vadd.xlane.f32.xlu0 %v55_v5  ;;  %p157_p5 = pnand %p156_p4, %p150_p1 }
  0xb4   :  { %v57_v6 = vpop.xlane.xlu0 %56 }
  0xb5   :  { %v58_v7 = vrot.slane %v57_v6, 4 }
  0xb7   :  { %v59_v8 = vadd.f32 %v58_v7, %v57_v6 }
  0xb9   :  { %v60_v9 = vrot.slane %v59_v8, 2 }
  0xbb   :  { %v61_v10 = vadd.f32 %v60_v9, %v59_v8 }
  0xbd   :  { %v62_v11 = vrot.slane %v61_v10, 1 }
  0xbf   :  { %v63_v12 = vadd.f32 %v62_v11, %v61_v10 }
  0xc1   :  { %83 = vpush %v63_v12 }
  0xf2   :  { %s84_s26 = spop %83 }
  0xf3   :  { %v65_v13 = vstv %s84_s26 }
  0xf4   :  { %66 = vst [vmem:[#allocation8] sm:$0xff] %v65_v13 }
  0xf5   :  { %160 = shalt.err (!%p157_p5)
}
  0xf6   :  { %76 = dma.vmem_to_hbm [thread:$0]  %s74_s2, 128, %s214_s3, [#allocation4]  }
  0xf7   :  { %173 = dma.done.wait [#allocation4], 128  }
  0xf8   :  { %174 = vsyncadd [#allocation4], 4294967168 }
  0xf9   :  { %80 = vsyncpa [#allocation3], 1 }
  0xfa   :  { %81 = vsyncpa [#allocation6], 1 }
  0xfb   :  { %82 = vsyncpa [#allocation4], 1 }

</bundles_post_ra>
